<compile_context>
chip_gen: v7x
topology: tpu7x:2x2x1
jax: 0.10.0
libtpu: 0.0.40
codegen_flags: <defaults>
</compile_context>

<pallas_src>
import functools

import jax
import jax.numpy as jnp
from jax.experimental import pallas as pl
from jax.experimental.pallas import tpu as pltpu

_LANES = 128


def _fold_to_lanes(v):
    """Tree-sum a (1, W) row (W a multiple of 128) down to a (1, 128) partial."""
    chunks = [v[:, k * _LANES:(k + 1) * _LANES] for k in range(v.shape[1] // _LANES)]
    while len(chunks) > 1:  # pairwise tree: short dependency chain on the VPU
        nxt = [a + b for a, b in zip(chunks[0::2], chunks[1::2])]
        if len(chunks) % 2:
            nxt.append(chunks[-1])
        chunks = nxt
    return chunks[0]


def _mae_kernel(labels_ref, pred_ref, out_ref, *, n_total, tile_n):
    i = pl.program_id(0)

    x = pred_ref[...].astype(jnp.float32)      # (C, TN)  classes on sublanes
    lbl = labels_ref[...]                      # (1, TN)  lane-dense labels

    # numerically-stable softmax along the class (sublane) axis
    m = jnp.max(x, axis=0, keepdims=True)      # (1, TN)
    e = jnp.exp(x - m)                         # (C, TN)
    s = jnp.sum(e, axis=0, keepdims=True)      # (1, TN)

    # target-class probability via a one-hot compare (no dynamic gather)
    cls = jax.lax.broadcasted_iota(jnp.int32, x.shape, 0)
    pt_num = jnp.sum(jnp.where(cls == lbl, e, 0.0), axis=0, keepdims=True)
    pt = pt_num * pl.reciprocal(s, approx=True)    # EUP slot, ~free

    mae = 1.0 - pt                             # (1, TN)

    last = pl.num_programs(0) - 1

    @pl.when(i != last)
    def _():
        # full tiles contain only valid rows -> no masking work at all
        out_ref[...] = _fold_to_lanes(mae)

    @pl.when(i == last)
    def _():
        # only the last tile can contain padded / out-of-bounds (garbage) rows
        row = i * tile_n + jax.lax.broadcasted_iota(jnp.int32, mae.shape, 1)
        out_ref[...] = _fold_to_lanes(jnp.where(row < n_total, mae, 0.0))


def mean_absolute_error(pred, labels, *, num_classes=None, scale=1.0, tile_n=32768):
    """pred: (N, C) logits (f32 or bf16); labels: (N,) int. Returns scalar loss."""
    n, c = pred.shape
    if num_classes is None:
        num_classes = c
    assert num_classes == c, "pred class axis must match num_classes"

    # pad rows only to a lane multiple (128); ragged tail handled in-kernel
    n_pad = pl.cdiv(n, _LANES) * _LANES

    # --- tile selection ------------------------------------------------------
    # VMEM-aware cap: double-buffered input blocks must fit comfortably inside
    # the 32 MiB scoped-VMEM budget requested below (safe on v5e/v6e/v7x).
    bytes_per_row = 2 * (c * pred.dtype.itemsize + 4)          # x2 = double buffer
    vmem_rows = max(_LANES, (24 * 1024 * 1024 // bytes_per_row) // _LANES * _LANES)
    # keep >=2 grid steps when possible so the "parallel" axis can use both
    # TensorCores on v7x
    half_rows = (n_pad // 2 // _LANES) * _LANES if n_pad >= 2 * _LANES else n_pad
    tile = min(tile_n, vmem_rows, half_rows, n_pad)
    tile = max(_LANES, (tile // _LANES) * _LANES)
    num_tiles = pl.cdiv(n_pad, tile)          # last block may be partial

    # rows-on-lanes view of the logits; no dtype up-cast here (bf16 passes
    # through at half the HBM bytes) and the transpose/pad may be fused into
    # the kernel's input DMA via allow_input_fusion.
    pred_t = jnp.pad(pred.T, ((0, 0), (0, n_pad - n)))                       # (C, n_pad)
    labels_p = jnp.pad(labels.astype(jnp.int32).reshape(1, n),
                       ((0, 0), (0, n_pad - n)))                             # (1, n_pad)

    kernel = functools.partial(_mae_kernel, n_total=n, tile_n=tile)

    partials = pl.pallas_call(
        kernel,
        out_shape=jax.ShapeDtypeStruct((1, num_tiles * _LANES), jnp.float32),
        grid_spec=pltpu.PrefetchScalarGridSpec(
            num_scalar_prefetch=0,
            grid=(num_tiles,),
            in_specs=[
                pl.BlockSpec((1, tile), lambda i: (0, i)),   # labels (lane-dense)
                pl.BlockSpec((c, tile), lambda i: (0, i)),   # logits (C, tile)
            ],
            out_specs=pl.BlockSpec((1, _LANES), lambda i: (0, i)),
        ),
        compiler_params=pltpu.CompilerParams(
            dimension_semantics=("parallel",),
            vmem_limit_bytes=32 * 1024 * 1024,
            allow_input_fusion=[True, True],
        ),
    )(labels_p, pred_t)

    # tiny final reduction (num_tiles * 128 floats) in plain XLA
    return scale * jnp.sum(partials) / n


def _reference(pred, labels, num_classes, scale):
    p = jax.nn.softmax(pred.astype(jnp.float32), axis=1)
    onehot = jax.nn.one_hot(labels, num_classes, dtype=jnp.float32)
    mae = 1.0 - jnp.sum(onehot * p, axis=1)
    return scale * jnp.mean(mae)


if __name__ == "__main__":
    key = jax.random.PRNGKey(0)
    k1, k2, k3, k4 = jax.random.split(key, 4)

    # tolerance relaxed to 5e-3 because the kernel uses the EUP approximate
    # reciprocal for the softmax denominator (per the performance review).

    # -- test 1: tiny single-tile case (batch=16, classes=10) -----------------
    n1, c1, scale1 = 16, 10, 1.0
    pred1 = jax.random.normal(k1, (n1, c1), dtype=jnp.float32)
    labels1 = jax.random.randint(k2, (n1,), 0, c1, dtype=jnp.int32)
    out1 = jax.block_until_ready(
        mean_absolute_error(pred1, labels1, num_classes=c1, scale=scale1))
    ref1 = _reference(pred1, labels1, c1, scale1)
    assert jnp.allclose(out1, ref1, rtol=5e-3, atol=5e-3), (out1, ref1)

    # -- test 2: multi-tile + ragged tail / partial last block (batch=520) ----
    n2, c2, scale2 = 520, 7, 2.5
    pred2 = jax.random.normal(k3, (n2, c2), dtype=jnp.float32)
    labels2 = jax.random.randint(k4, (n2,), 0, c2, dtype=jnp.int32)
    out2 = jax.block_until_ready(
        mean_absolute_error(pred2, labels2, num_classes=c2, scale=scale2))
    ref2 = _reference(pred2, labels2, c2, scale2)
    assert jnp.allclose(out2, ref2, rtol=5e-3, atol=5e-3), (out2, ref2)

    print("KERNEL_OK")
</pallas_src>

<mosaic_0001>
module attributes {stable_mosaic.version = 11 : i64} {
  func.func @_mae_kernel(%arg0: i32, %arg1: memref<1x128xi32, #tpu.memory_space<vmem>>, %arg2: memref<10x128xf32, #tpu.memory_space<vmem>>, %arg3: memref<1x128xf32, #tpu.memory_space<vmem>>) attributes {dimension_semantics = [#tpu.dimension_semantics<parallel>], iteration_bounds = array<i64: 1>, scalar_prefetch = 0 : i64, scratch_operands = 0 : i64, tpu.core_type = #tpu.core_type<tc>, window_params = [{transform_indices = @transform_0, window_bounds = array<i64: 1, 128>}, {transform_indices = @transform_1, window_bounds = array<i64: 10, 128>}, {transform_indices = @transform_2, window_bounds = array<i64: 1, 128>}]} {
    %c0 = arith.constant 0 : index
    %c0_0 = arith.constant 0 : index
    %0 = vector.load %arg2[%c0, %c0_0] : memref<10x128xf32, #tpu.memory_space<vmem>>, vector<10x128xf32>
    %c0_1 = arith.constant 0 : index
    %c0_2 = arith.constant 0 : index
    %1 = vector.load %arg1[%c0_1, %c0_2] : memref<1x128xi32, #tpu.memory_space<vmem>>, vector<1x128xi32>
    %cst = arith.constant dense<0xFF800000> : vector<128xf32>
    %2 = vector.multi_reduction <maximumf>, %0, %cst [0] : vector<10x128xf32> to vector<128xf32>
    %3 = vector.shape_cast %2 : vector<128xf32> to vector<1x128xf32>
    %4 = vector.broadcast %3 : vector<1x128xf32> to vector<10x128xf32>
    %5 = arith.subf %0, %4 : vector<10x128xf32>
    %6 = math.exp %5 : vector<10x128xf32>
    %cst_3 = arith.constant dense<0.000000e+00> : vector<128xf32>
    %7 = vector.multi_reduction <add>, %6, %cst_3 [0] : vector<10x128xf32> to vector<128xf32>
    %8 = vector.shape_cast %7 : vector<128xf32> to vector<1x128xf32>
    %9 = tpu.iota {dimensions = array<i32: 0>} : vector<10x128xi32>
    %10 = vector.broadcast %1 : vector<1x128xi32> to vector<10x128xi32>
    %11 = arith.cmpi eq, %9, %10 : vector<10x128xi32>
    %cst_4 = arith.constant 0.000000e+00 : f32
    %12 = vector.broadcast %cst_4 : f32 to vector<10x128xf32>
    %13 = arith.select %11, %6, %12 : vector<10x128xi1>, vector<10x128xf32>
    %cst_5 = arith.constant dense<0.000000e+00> : vector<128xf32>
    %14 = vector.multi_reduction <add>, %13, %cst_5 [0] : vector<10x128xf32> to vector<128xf32>
    %15 = vector.shape_cast %14 : vector<128xf32> to vector<1x128xf32>
    %16 = tpu.reciprocal %8 {approx = true} : vector<1x128xf32> -> vector<1x128xf32>
    %17 = arith.mulf %15, %16 : vector<1x128xf32>
    %cst_6 = arith.constant 1.000000e+00 : f32
    %18 = vector.broadcast %cst_6 : f32 to vector<1x128xf32>
    %19 = arith.subf %18, %17 : vector<1x128xf32>
    %c0_i32 = arith.constant 0 : i32
    %20 = arith.cmpi ne, %arg0, %c0_i32 : i32
    %21 = arith.extui %20 : i1 to i32
    %c0_i32_7 = arith.constant 0 : i32
    %22 = arith.cmpi ne, %21, %c0_i32_7 : i32
    scf.if %22 {
      %c0_10 = arith.constant 0 : index
      %c0_11 = arith.constant 0 : index
      %26 = vector.load %arg3[%c0_10, %c0_11] : memref<1x128xf32, #tpu.memory_space<vmem>>, vector<1x128xf32>
      tpu.vector_store %arg3[%c0_10, %c0_11], %19 {strides = array<i32>} : memref<1x128xf32, #tpu.memory_space<vmem>>, vector<1x128xf32>,
    } else {
    }
    %c0_i32_8 = arith.constant 0 : i32
    %23 = arith.cmpi eq, %arg0, %c0_i32_8 : i32
    %24 = arith.extui %23 : i1 to i32
    %c0_i32_9 = arith.constant 0 : i32
    %25 = arith.cmpi ne, %24, %c0_i32_9 : i32
    scf.if %25 {
      %c128_i32 = arith.constant 128 : i32
      %26 = arith.muli %arg0, %c128_i32 : i32
      %27 = tpu.iota {dimensions = array<i32: 1>} : vector<1x128xi32>
      %28 = vector.broadcast %26 : i32 to vector<1x128xi32>
      %29 = arith.addi %28, %27 : vector<1x128xi32>
      %c16_i32 = arith.constant 16 : i32
      %30 = vector.broadcast %c16_i32 : i32 to vector<1x128xi32>
      %31 = arith.cmpi slt, %29, %30 : vector<1x128xi32>
      %cst_10 = arith.constant 0.000000e+00 : f32
      %32 = vector.broadcast %cst_10 : f32 to vector<1x128xf32>
      %33 = arith.select %31, %19, %32 : vector<1x128xi1>, vector<1x128xf32>
      %c0_11 = arith.constant 0 : index
      %c0_12 = arith.constant 0 : index
      %34 = vector.load %arg3[%c0_11, %c0_12] : memref<1x128xf32, #tpu.memory_space<vmem>>, vector<1x128xf32>
      tpu.vector_store %arg3[%c0_11, %c0_12], %33 {strides = array<i32>} : memref<1x128xf32, #tpu.memory_space<vmem>>, vector<1x128xf32>,
    } else {
    }
    return
  }
  func.func @transform_0(%arg0: i32) -> (i32, i32) {
    %c0_i32 = arith.constant 0 : i32
    %c0_i32_0 = arith.constant 0 : i32
    return %c0_i32, %arg0 : i32, i32
  }
  func.func @transform_1(%arg0: i32) -> (i32, i32) {
    %c0_i32 = arith.constant 0 : i32
    %c0_i32_0 = arith.constant 0 : i32
    return %c0_i32, %arg0 : i32, i32
  }
  func.func @transform_2(%arg0: i32) -> (i32, i32) {
    %c0_i32 = arith.constant 0 : i32
    %c0_i32_0 = arith.constant 0 : i32
    return %c0_i32, %arg0 : i32, i32
  }
}

</mosaic_0001>

<bundles_post_ra>
// kernel: tpu_custom_call.1
= control target key start
LH: loop header
LB: loop body
LE: loop exit
PB: predicated region body
PF: predicated region fallthrough
CT: control target
= control target key end

     0   :  { %7 = vsyncpa [#allocation3], 0  ;;  %s269_s0 = inlined_call_operand.hbm [shape: s32[1,128], index: 0, kind: input, shape index: {}]   ;;  %s270_s1 = inlined_call_operand.hbm [shape: f32[10,128], index: 1, kind: input, shape index: {}]   ;;  %s271_s2 = inlined_call_operand.hbm [shape: f32[1,128], index: 2, kind: output, shape index: {}]  }
   0x1   :  { %8 = vsyncpa [#allocation6], 0 }
   0x2   :  { %9 = vsyncpa [#allocation4], 0  ;;  %s203_s9 = smov [#allocation2]   ;;  %s204_s11 = smov [#allocation5]  }
   0x3   :  { %s16_s10 = sshll.u32 %s203_s9, 4  ;;  %s25_s12 = sshll.u32 %s204_s11, 4  ;;  %s17_s10 = int_to_ptr.vmem [resolvable:$true] %s16_s10  ;;  %s223_s12 = int_to_ptr.vmem [resolvable:$true] %s25_s12 }
   0x4   :  { %s131_s15 = scalar_lea.hbm %s269_s0, 16 }
   0x5   :  { %p132_p0 = scmp.ne.s32.totalorder %s269_s0, %s131_s15  ;;  %p135_p1 = scmp.lt.u32.totalorder %s131_s15, %s269_s0 }
   0x7   :  { %p137_p2 = pnand %p135_p1, %p132_p0 }
   0x9   :  { %140 = shalt.err (!%p137_p2)
}
   0xa   :  { %s141_s20 = scalar_lea.vmem %s17_s10, 16  ;;  %s145_s21 = scalar_lea.vmem %s17_s10, 32 }
   0xb   :  { %p142_p3 = scmp.ne.s32.totalorder %s17_s10, %s141_s20  ;;  %p146_p4 = scmp.lt.s32.totalorder %s17_s10, %s17_s10 }
   0xc   :  { %p147_p5 = scmp.lt.s32.totalorder %s145_s21, %s141_s20 }
   0xe   :  { %p148_p6 = por %p147_p5, %p146_p4 }
  0x10   :  { %p149_p7 = pnand %p148_p6, %p142_p3 }
  0x12   :  { %152 = shalt.err (!%p149_p7)
}
  0x13   :  { %19 = dma.hbm_to_vmem [thread:$0]  %s269_s0, 16, %s17_s10, [#allocation3]  }
  0x14   :  { %s153_s26 = scalar_lea.hbm %s270_s1, 256 }
  0x15   :  { %p154_p8 = scmp.ne.s32.totalorder %s270_s1, %s153_s26  ;;  %p157_p9 = scmp.lt.u32.totalorder %s153_s26, %s270_s1 }
  0x17   :  { %p159_p10 = pnand %p157_p9, %p154_p8 }
  0x19   :  { %162 = shalt.err (!%p159_p10)
}
  0x1a   :  { %s163_s3 = scalar_lea.vmem %s223_s12, 256  ;;  %p168_p12 = scmp.lt.s32.totalorder %s223_s12, %s223_s12 }
  0x1b   :  { %p164_p11 = scmp.ne.s32.totalorder %s223_s12, %s163_s3  ;;  %p169_p13 = scmp.lt.s32.totalorder %s163_s3, %s163_s3 }
  0x1d   :  { %p170_p0 = por %p169_p13, %p168_p12 }
  0x1f   :  { %p171_p1 = pnand %p170_p0, %p164_p11 }
  0x21   :  { %174 = shalt.err (!%p171_p1)
}
  0x22   :  { %s205_s0 = smov 128   ;;  %s206_s4 = smov 8  }
  0x23   :  { %31 = dma.hbm_to_vmem [thread:$0]  %s270_s1, 256, %s223_s12, [#allocation6], %s205_s0, %s205_s0, %s206_s4  }
  0x24   :  { %197 = dma.done.wait [#allocation3], 16  }
  0x25   :  { %198 = vsyncadd [#allocation3], 4294967280 }
  0x26   :  { %199 = dma.done.wait [#allocation6], 256  }
  0x27   :  { %200 = vsyncadd [#allocation6], 4294967040  ;;  %vm41_vm0 = vcmask 1041408   ;;  %v38_v0 = vld [vmem:[#allocation5] sm:$0xff]  ;;  %v39_v1 = vld [vmem:[#allocation5 + $0x8] sm:$0x3]  ;;  %v64_v12 = vlaneseq }
  0x28   :  { %v42_v2 = vsel %vm41_vm0, %v39_v1, -inf  ;;  %v119_v16 = vld [vmem:[#allocation2] ss:$0 sm:$0xff]  ;;  %s207_s1 = smov [#allocation7]  }
  0x29   :  { %v43_v3 = vmax.f32 %v38_v0, %v42_v2  ;;  %v65_v15 = vshrl.u32 %v64_v12, 7  ;;  %v97_v38 = vand.u32 127, %v64_v12  ;;  %s109_s7 = sshll.u32 %s207_s1, 4  ;;  %s110_s7 = int_to_ptr.vmem [resolvable:$true] %s109_s7 }
  0x2a   :  { %s175_s8 = scalar_lea.vmem %s110_s7, 16  ;;  %s179_s9 = scalar_lea.vmem %s110_s7, 32 }
  0x2b   :  { %v44_v4 = vrot.slane %v43_v3, 4  ;;  %v66_v17 = vadd.s32 8, %v65_v15  ;;  %vm71_vm1 = vcmp.eq.s32.totalorder %v65_v15, %v119_v16  ;;  %vm100_vm3 = vcmp.lt.s32.totalorder %v97_v38, 16  ;;  %p176_p2 = scmp.ne.s32.totalorder %s110_s7, %s175_s8  ;;  %p180_p3 = scmp.lt.s32.totalorder %s110_s7, %s110_s7 }
  0x2c   :  { %p181_p4 = scmp.lt.s32.totalorder %s179_s9, %s175_s8 }
  0x2d   :  { %v45_v5 = vmax.f32 %v43_v3, %v44_v4  ;;  %vm72_vm2 = vcmp.eq.s32.totalorder %v66_v17, %v119_v16 }
  0x2e   :  { %p182_p5 = por %p181_p4, %p180_p3 }
  0x2f   :  { %v46_v6 = vrot.slane %v45_v5, 2 }
  0x30   :  { %p183_p6 = pnand %p182_p5, %p176_p2 }
  0x31   :  { %v47_v7 = vmax.f32 %v45_v5, %v46_v6 }
  0x33   :  { %v48_v8 = vrot.slane %v47_v7, 1 }
  0x35   :  { %v49_v9 = vmax.f32 %v47_v7, %v48_v8 }
  0x37   :  { %v50_v10 = vsub.f32 %v38_v0, %v49_v9  ;;  %v51_v11 = vsub.f32 %v39_v1, %v49_v9 }
  0x39   :  { %v52_v13 = vmul.f32 1.442695, %v50_v10  ;;  %v54_v14 = vmul.f32 1.442695, %v51_v11 }
  0x3b   :  { %125 = vpow2.f32 %v52_v13 }
  0x3c   :  { %127 = vpow2.f32 %v54_v14 }
  0x45   :  { %v126_v18 = vpop.eup %125 }
  0x46   :  { %v128_v19 = vpop.eup %127  ;;  %v73_v20 = vsel %vm71_vm1, %v126_v18, 0.0 }
  0x47   :  { %v56_v21 = vsel %vm41_vm0, %v128_v19, 0.0  ;;  %v74_v22 = vsel %vm72_vm2, %v128_v19, 0.0 }
  0x48   :  { %v57_v23 = vadd.f32 %v126_v18, %v56_v21  ;;  %v75_v24 = vsel %vm41_vm0, %v74_v22, 0.0 }
  0x49   :  { %v76_v25 = vadd.f32 %v75_v24, %v73_v20 }
  0x4a   :  { %v58_v26 = vrot.slane %v57_v23, 4 }
  0x4b   :  { %v77_v27 = vrot.slane %v76_v25, 4 }
  0x4c   :  { %v59_v28 = vadd.f32 %v58_v26, %v57_v23 }
  0x4d   :  { %v78_v29 = vadd.f32 %v77_v27, %v76_v25 }
  0x4e   :  { %v60_v30 = vrot.slane %v59_v28, 2 }
  0x4f   :  { %v79_v32 = vrot.slane %v78_v29, 2 }
  0x50   :  { %v61_v31 = vadd.f32 %v60_v30, %v59_v28 }
  0x51   :  { %v80_v35 = vadd.f32 %v79_v32, %v78_v29 }
  0x52   :  { %v62_v33 = vrot.slane %v61_v31, 1 }
  0x53   :  { %v81_v36 = vrot.slane %v80_v35, 1 }
  0x54   :  { %v63_v34 = vadd.f32 %v62_v33, %v61_v31 }
  0x55   :  { %v82_v37 = vadd.f32 %v81_v36, %v80_v35 }
  0x56   :  { %129 = vrcp.f32 %v63_v34 }
  0x60   :  { %v130_v39 = vpop.eup %129 }
  0x61   :  { %v84_v40 = vmul.f32 %v130_v39, %v82_v37 }
  0x63   :  { %v85_v41 = vsub.f32 1.0, %v84_v40 }
  0x65   :  { %v101_v42 = vsel %vm100_vm3, %v85_v41, 0.0 }
  0x66   :  { %102 = vst [vmem:[#allocation7] sm:$0x1] %v101_v42 }
  0x67   :  { %186 = shalt.err (!%p183_p6)
}
  0x68   :  { %s187_s12 = scalar_lea.hbm %s271_s2, 16 }
  0x69   :  { %p188_p7 = scmp.ne.s32.totalorder %s271_s2, %s187_s12  ;;  %p191_p8 = scmp.lt.u32.totalorder %s187_s12, %s271_s2 }
  0x6b   :  { %p193_p9 = pnand %p191_p8, %p188_p7 }
  0x6d   :  { %196 = shalt.err (!%p193_p9)
}
  0x6e   :  { %112 = dma.vmem_to_hbm [thread:$0]  %s110_s7, 16, %s271_s2, [#allocation4]  }
  0x6f   :  { %201 = dma.done.wait [#allocation4], 16  }
  0x70   :  { %202 = vsyncadd [#allocation4], 4294967280 }
  0x71   :  { %116 = vsyncpa [#allocation3], 1 }
  0x72   :  { %117 = vsyncpa [#allocation6], 1 }
  0x73   :  { %118 = vsyncpa [#allocation4], 1 }

</bundles_post_ra>
